<compile_context>
chip_gen: v5e
topology: v5e:2x2
jax: 0.10.0
libtpu: 0.0.40
codegen_flags: <defaults>
</compile_context>

<pallas_src>
import numpy as np
import jax
import jax.numpy as jnp
from jax.experimental import pallas as pl
from jax.experimental.pallas import tpu as pltpu

WIN_SIZE = 11
WIN_SIGMA = 1.5
DATA_RANGE = 255.0           # pytorch_msssim SSIM default
K1, K2 = 0.01, 0.03
C1 = (K1 * DATA_RANGE) ** 2
C2 = (K2 * DATA_RANGE) ** 2
NUM_PIPES = 5                # x, y, x*x, y*y, x*y


def _fspecial_gauss_1d(size, sigma):
    coords = np.arange(size, dtype=np.float32) - size // 2
    g = np.exp(-(coords ** 2) / (2.0 * sigma ** 2))
    return (g / g.sum()).astype(np.float32)


def _band_matrix(length, taps):
    """(length, length - win + 1) matrix so that v @ M == 'valid' correlation."""
    win = taps.shape[0]
    out_len = length - win + 1
    m = np.zeros((length, out_len), dtype=np.float32)
    for j in range(out_len):
        m[j:j + win, j] = taps
    return m


def make_ssim_loss_fn(shape):
    n, c, d, h, w = shape
    assert min(d, h, w) >= WIN_SIZE, "spatial dims must be >= win_size"
    taps = _fspecial_gauss_1d(WIN_SIZE, WIN_SIGMA)   # exact f32 taps
    do, ho, wo = d - WIN_SIZE + 1, h - WIN_SIZE + 1, w - WIN_SIZE + 1

    # (a) H & W valid conv fused into one right-matmul: kron(MH, MW).
    m_hw = np.kron(_band_matrix(h, taps), _band_matrix(w, taps))   # (H*W, Ho*Wo)
    # (b) D valid conv as a left-matmul, block-diagonal over the 5 pipelines.
    m_d = np.kron(np.eye(NUM_PIPES, dtype=np.float32),
                  _band_matrix(d, taps).T)                         # (5*Do, 5*D)
    # TODO(synk): for large H*W the Kronecker matrix gets big; switch to
    # per-axis band matmuls (+ a transpose) and D-axis halo tiling there.
    assert m_hw.size * 4 < 8 * 1024 * 1024, "Kronecker HW matrix too large"

    m_hw = jnp.asarray(m_hw)
    m_d = jnp.asarray(m_d)

    def kernel(m_hw_ref, m_d_ref, x_ref, y_ref, o_ref):
        x = x_ref[...].astype(jnp.float32)          # (D, H*W), lane-dense
        y = y_ref[...].astype(jnp.float32)

        # Batch the five Gaussian pipelines along the sublane axis.
        # D is a multiple of 8 here, so the concat is vreg-aligned (cheap).
        p = jnp.concatenate([x, y, x * x, y * y, x * y], axis=0)   # (5*D, H*W)

        # H & W valid Gaussian conv: one MXU matmul.
        r_hw = jnp.dot(p, m_hw_ref[...],
                       preferred_element_type=jnp.float32)         # (5*D, Ho*Wo)

        # D valid Gaussian conv: block-diagonal band matmul on the MXU.
        r = jnp.dot(m_d_ref[...], r_hw,
                    preferred_element_type=jnp.float32)            # (5*Do, Ho*Wo)

        mu1 = r[0 * do:1 * do, :]
        mu2 = r[1 * do:2 * do, :]
        ex2 = r[2 * do:3 * do, :]
        ey2 = r[3 * do:4 * do, :]
        exy = r[4 * do:5 * do, :]

        mu1_sq = mu1 * mu1
        mu2_sq = mu2 * mu2
        mu1_mu2 = mu1 * mu2
        sigma1_sq = ex2 - mu1_sq
        sigma2_sq = ey2 - mu2_sq
        sigma12 = exy - mu1_mu2

        # Fused single division (numerically identical to the two-divide form).
        num = (2.0 * mu1_mu2 + C1) * (2.0 * sigma12 + C2)
        den = (mu1_sq + mu2_sq + C1) * (sigma1_sq + sigma2_sq + C2)
        ssim_map = num / den

        block_mean = jnp.mean(ssim_map)             # per-(n, c) spatial mean
        o_ref[...] = jnp.zeros_like(o_ref) + block_mean

    call = pl.pallas_call(
        kernel,
        out_shape=jax.ShapeDtypeStruct((n, c, 1, 1), jnp.float32),
        grid_spec=pltpu.PrefetchScalarGridSpec(
            num_scalar_prefetch=0,
            grid=(n, c),
            in_specs=[
                # Grid-invariant conv matrices: DMA'd once, reused every step.
                pl.BlockSpec((h * w, ho * wo), lambda ni, ci: (0, 0)),
                pl.BlockSpec((NUM_PIPES * do, NUM_PIPES * d),
                             lambda ni, ci: (0, 0)),
                pl.BlockSpec((None, None, d, h * w),
                             lambda ni, ci: (ni, ci, 0, 0)),
                pl.BlockSpec((None, None, d, h * w),
                             lambda ni, ci: (ni, ci, 0, 0)),
            ],
            out_specs=pl.BlockSpec((None, None, 1, 1),
                                   lambda ni, ci: (ni, ci, 0, 0)),
        ),
        compiler_params=pltpu.CompilerParams(
            dimension_semantics=("parallel", "parallel"),
            vmem_limit_bytes=32 * 1024 * 1024),
    )

    @jax.jit
    def ssim_loss(x, y):
        x2 = x.reshape(n, c, d, h * w)              # free reshape (contiguous)
        y2 = y.reshape(n, c, d, h * w)
        per_block = call(m_hw, m_d, x2, y2)         # (N, C, 1, 1) SSIM means
        return 1.0 - jnp.mean(per_block)            # loss = 1 - SSIM

    return ssim_loss


def ref_ssim_loss(x, y):
    """Independent numpy (float64) reference for validation."""
    taps = _fspecial_gauss_1d(WIN_SIZE, WIN_SIGMA).astype(np.float64)

    def g3d(v):
        for ax in range(3):
            v = np.apply_along_axis(
                lambda m: np.correlate(m, taps, mode="valid"), ax, v)
        return v

    vals = []
    for i in range(x.shape[0]):
        for j in range(x.shape[1]):
            X = x[i, j].astype(np.float64)
            Y = y[i, j].astype(np.float64)
            mu1, mu2 = g3d(X), g3d(Y)
            s11 = g3d(X * X) - mu1 ** 2
            s22 = g3d(Y * Y) - mu2 ** 2
            s12 = g3d(X * Y) - mu1 * mu2
            cs = (2 * s12 + C2) / (s11 + s22 + C2)
            sm = ((2 * mu1 * mu2 + C1) / (mu1 ** 2 + mu2 ** 2 + C1)) * cs
            vals.append(sm.mean())
    return 1.0 - float(np.mean(vals))


if __name__ == "__main__":
    # N, C, D, H, W  (channel=1, spatial_dims=3 as in the module defaults)
    shape = (2, 1, 16, 16, 16)
    key = jax.random.PRNGKey(0)
    kx, ky = jax.random.split(key)
    x = jax.random.uniform(kx, shape, dtype=jnp.float32) * 255.0
    y = jax.random.uniform(ky, shape, dtype=jnp.float32) * 255.0

    loss_fn = make_ssim_loss_fn(shape)
    loss = jax.block_until_ready(loss_fn(x, y))

    ref = ref_ssim_loss(np.asarray(x), np.asarray(y))
    assert abs(float(loss) - ref) < 5e-4, (float(loss), ref)
    print("KERNEL_OK")
</pallas_src>

<mosaic_0001>
module attributes {stable_mosaic.version = 11 : i64} {
  func.func @kernel(%arg0: i32, %arg1: i32, %arg2: memref<256x36xf32, #tpu.memory_space<vmem>>, %arg3: memref<30x80xf32, #tpu.memory_space<vmem>>, %arg4: memref<1x1x16x256xf32, #tpu.memory_space<vmem>>, %arg5: memref<1x1x16x256xf32, #tpu.memory_space<vmem>>, %arg6: memref<1x1x1x1xf32, #tpu.memory_space<vmem>>) attributes {dimension_semantics = [#tpu.dimension_semantics<parallel>, #tpu.dimension_semantics<parallel>], iteration_bounds = array<i64: 2, 1>, scalar_prefetch = 0 : i64, scratch_operands = 0 : i64, tpu.core_type = #tpu.core_type<tc>, window_params = [{pipeline_mode = #tpu.pipeline_mode<synchronous>, transform_indices = @transform_0, window_bounds = array<i64: 256, 36>}, {pipeline_mode = #tpu.pipeline_mode<synchronous>, transform_indices = @transform_1, window_bounds = array<i64: 30, 80>}, {transform_indices = @transform_2, window_bounds = array<i64: 1, 1, 16, 256>}, {transform_indices = @transform_3, window_bounds = array<i64: 1, 1, 16, 256>}, {transform_indices = @transform_4, window_bounds = array<i64: 1, 1, 1, 1>}]} {
    %c0 = arith.constant 0 : index
    %c0_0 = arith.constant 0 : index
    %c0_1 = arith.constant 0 : index
    %c0_2 = arith.constant 0 : index
    %0 = vector.load %arg4[%c0, %c0_0, %c0_1, %c0_2] : memref<1x1x16x256xf32, #tpu.memory_space<vmem>>, vector<1x1x16x256xf32>
    %1 = vector.shape_cast %0 : vector<1x1x16x256xf32> to vector<16x256xf32>
    %c0_3 = arith.constant 0 : index
    %c0_4 = arith.constant 0 : index
    %c0_5 = arith.constant 0 : index
    %c0_6 = arith.constant 0 : index
    %2 = vector.load %arg5[%c0_3, %c0_4, %c0_5, %c0_6] : memref<1x1x16x256xf32, #tpu.memory_space<vmem>>, vector<1x1x16x256xf32>
    %3 = vector.shape_cast %2 : vector<1x1x16x256xf32> to vector<16x256xf32>
    %4 = arith.mulf %1, %1 : vector<16x256xf32>
    %5 = arith.mulf %3, %3 : vector<16x256xf32>
    %6 = arith.mulf %1, %3 : vector<16x256xf32>
    %7 = tpu.concatenate %1, %3, %4, %5, %6 in 0 : vector<16x256xf32>, vector<16x256xf32>, vector<16x256xf32>, vector<16x256xf32>, vector<16x256xf32> -> vector<80x256xf32>
    %c0_7 = arith.constant 0 : index
    %c0_8 = arith.constant 0 : index
    %8 = vector.load %arg2[%c0_7, %c0_8] : memref<256x36xf32, #tpu.memory_space<vmem>>, vector<256x36xf32>
    %cst = arith.constant dense<0.000000e+00> : vector<80x36xf32>
    %9 = tpu.matmul %7, %8, %cst {dimension_numbers = #tpu.dot_dimension_numbers<[1], [0], [0], [1], [0, 0, 1, 1], [], []>} : vector<80x256xf32>, vector<256x36xf32>, vector<80x36xf32> -> vector<80x36xf32>
    %c0_9 = arith.constant 0 : index
    %c0_10 = arith.constant 0 : index
    %10 = vector.load %arg3[%c0_9, %c0_10] : memref<30x80xf32, #tpu.memory_space<vmem>>, vector<30x80xf32>
    %cst_11 = arith.constant dense<0.000000e+00> : vector<30x36xf32>
    %11 = tpu.matmul %10, %9, %cst_11 {dimension_numbers = #tpu.dot_dimension_numbers<[1], [0], [0], [1], [0, 0, 1, 1], [], []>} : vector<30x80xf32>, vector<80x36xf32>, vector<30x36xf32> -> vector<30x36xf32>
    %12 = vector.extract_strided_slice %11 {offsets = [0, 0], sizes = [6, 36], strides = [1, 1]} : vector<30x36xf32> to vector<6x36xf32>
    %13 = vector.extract_strided_slice %11 {offsets = [6, 0], sizes = [6, 36], strides = [1, 1]} : vector<30x36xf32> to vector<6x36xf32>
    %14 = vector.extract_strided_slice %11 {offsets = [12, 0], sizes = [6, 36], strides = [1, 1]} : vector<30x36xf32> to vector<6x36xf32>
    %15 = vector.extract_strided_slice %11 {offsets = [18, 0], sizes = [6, 36], strides = [1, 1]} : vector<30x36xf32> to vector<6x36xf32>
    %16 = vector.extract_strided_slice %11 {offsets = [24, 0], sizes = [6, 36], strides = [1, 1]} : vector<30x36xf32> to vector<6x36xf32>
    %17 = arith.mulf %12, %12 : vector<6x36xf32>
    %18 = arith.mulf %13, %13 : vector<6x36xf32>
    %19 = arith.mulf %12, %13 : vector<6x36xf32>
    %20 = arith.subf %14, %17 : vector<6x36xf32>
    %21 = arith.subf %15, %18 : vector<6x36xf32>
    %22 = arith.subf %16, %19 : vector<6x36xf32>
    %cst_12 = arith.constant 2.000000e+00 : f32
    %23 = vector.broadcast %cst_12 : f32 to vector<6x36xf32>
    %24 = arith.mulf %23, %19 : vector<6x36xf32>
    %cst_13 = arith.constant 6.502500e+00 : f32
    %25 = vector.broadcast %cst_13 : f32 to vector<6x36xf32>
    %26 = arith.addf %24, %25 : vector<6x36xf32>
    %cst_14 = arith.constant 2.000000e+00 : f32
    %27 = vector.broadcast %cst_14 : f32 to vector<6x36xf32>
    %28 = arith.mulf %27, %22 : vector<6x36xf32>
    %cst_15 = arith.constant 5.852250e+01 : f32
    %29 = vector.broadcast %cst_15 : f32 to vector<6x36xf32>
    %30 = arith.addf %28, %29 : vector<6x36xf32>
    %31 = arith.mulf %26, %30 : vector<6x36xf32>
    %32 = arith.addf %17, %18 : vector<6x36xf32>
    %cst_16 = arith.constant 6.502500e+00 : f32
    %33 = vector.broadcast %cst_16 : f32 to vector<6x36xf32>
    %34 = arith.addf %32, %33 : vector<6x36xf32>
    %35 = arith.addf %20, %21 : vector<6x36xf32>
    %cst_17 = arith.constant 5.852250e+01 : f32
    %36 = vector.broadcast %cst_17 : f32 to vector<6x36xf32>
    %37 = arith.addf %35, %36 : vector<6x36xf32>
    %38 = arith.mulf %34, %37 : vector<6x36xf32>
    %39 = arith.divf %31, %38 : vector<6x36xf32>
    %40 = vector.shape_cast %39 : vector<6x36xf32> to vector<1x6x36xf32>
    %cst_18 = arith.constant dense<0.000000e+00> : vector<1xf32>
    %41 = vector.multi_reduction <add>, %40, %cst_18 [1, 2] : vector<1x6x36xf32> to vector<1xf32>
    %42 = vector.shape_cast %41 : vector<1xf32> to vector<1x1x1xf32>
    %43 = vector.extract %42[0, 0, 0] : f32 from vector<1x1x1xf32>
    %cst_19 = arith.constant 2.160000e+02 : f32
    %44 = arith.divf %43, %cst_19 : f32
    %cst_20 = arith.constant 0.000000e+00 : f32
    %45 = vector.broadcast %cst_20 : f32 to vector<1x1xf32>
    %46 = vector.broadcast %44 : f32 to vector<1x1xf32>
    %47 = arith.addf %45, %46 : vector<1x1xf32>
    %c0_21 = arith.constant 0 : index
    %c0_22 = arith.constant 0 : index
    %c0_23 = arith.constant 0 : index
    %c0_24 = arith.constant 0 : index
    %48 = vector.load %arg6[%c0_21, %c0_22, %c0_23, %c0_24] : memref<1x1x1x1xf32, #tpu.memory_space<vmem>>, vector<1x1x1x1xf32>
    %49 = vector.shape_cast %48 : vector<1x1x1x1xf32> to vector<1x1xf32>
    %50 = vector.shape_cast %47 : vector<1x1xf32> to vector<1x1x1x1xf32>
    tpu.vector_store %arg6[%c0_21, %c0_22, %c0_23, %c0_24], %50 {strides = array<i32>} : memref<1x1x1x1xf32, #tpu.memory_space<vmem>>, vector<1x1x1x1xf32>,
    return
  }
  func.func @transform_0(%arg0: i32, %arg1: i32) -> (i32, i32) {
    %c0_i32 = arith.constant 0 : i32
    %c0_i32_0 = arith.constant 0 : i32
    %c0_i32_1 = arith.constant 0 : i32
    return %c0_i32, %c0_i32_0 : i32, i32
  }
  func.func @transform_1(%arg0: i32, %arg1: i32) -> (i32, i32) {
    %c0_i32 = arith.constant 0 : i32
    %c0_i32_0 = arith.constant 0 : i32
    %c0_i32_1 = arith.constant 0 : i32
    return %c0_i32, %c0_i32_0 : i32, i32
  }
  func.func @transform_2(%arg0: i32, %arg1: i32) -> (i32, i32, i32, i32) {
    %c0_i32 = arith.constant 0 : i32
    %c0_i32_0 = arith.constant 0 : i32
    %c0_i32_1 = arith.constant 0 : i32
    return %arg0, %arg1, %c0_i32, %c0_i32_0 : i32, i32, i32, i32
  }
  func.func @transform_3(%arg0: i32, %arg1: i32) -> (i32, i32, i32, i32) {
    %c0_i32 = arith.constant 0 : i32
    %c0_i32_0 = arith.constant 0 : i32
    %c0_i32_1 = arith.constant 0 : i32
    return %arg0, %arg1, %c0_i32, %c0_i32_0 : i32, i32, i32, i32
  }
  func.func @transform_4(%arg0: i32, %arg1: i32) -> (i32, i32, i32, i32) {
    %c0_i32 = arith.constant 0 : i32
    %c0_i32_0 = arith.constant 0 : i32
    %c0_i32_1 = arith.constant 0 : i32
    return %arg0, %arg1, %c0_i32, %c0_i32_0 : i32, i32, i32, i32
  }
}

</mosaic_0001>

<bundles_post_ra>
// kernel: ssim_loss.1
= control target key start
LH: loop header
LB: loop body
LE: loop exit
PB: predicated region body
PF: predicated region fallthrough
CT: control target
= control target key end

     0   :  { %s777_s15 = smov 0   ;;  %s779_s16 = smov 0   ;;  %s937_s0 = inlined_call_operand.vmem [shape: f32[256,36], index: 0, kind: input, shape index: {}]   ;;  %s938_s1 = inlined_call_operand.vmem [shape: f32[30,80], index: 1, kind: input, shape index: {}]   ;;  %s939_s2 = inlined_call_operand.vmem [shape: f32[2,1,16,256], index: 2, kind: input, shape index: {}]   ;;  %s940_s3 = inlined_call_operand.vmem [shape: f32[2,1,16,256], index: 3, kind: input, shape index: {}]   ;;  %s941_s4 = inlined_call_operand.vmem [shape: f32[2,1,1,1], index: 4, kind: output, shape index: {}]  }
   0x1   :  { %s781_s17 = smov 0  }
   0x2 LB: > { %s26_s18 = sadd.s32 1, %s745_s16  ;;  %p639_p0 = scmp.ge.s32.totalorder %s749_s17, 1  ;;  %s749_s17 = sphi %s781_s17, %s14_s17   ;;  %s745_s16 = sphi %s779_s16, %s943_s16   ;;  %s741_s15 = sphi %s777_s15, %s942_s15  }
   0x3   : > { %p28_p1 = scmp.ge.s32.totalorder %s26_s18, 2  ;;  %p198_p2 = scmp.lt.s32.totalorder %s749_s17, 3 }
   0x5   : > { %s945_s18 = smov (%p28_p1, %s26_s18), 0  ;;  %p199_p3 = pnand %p639_p0, %p198_p2 }
   0x6   : > { %p238_p4 = scmp.lt.s32.totalorder (!%p199_p3), %s741_s15, 1 }
   0x7   : > { %202 = sbr.rel (%p199_p3) target bundleno = 586 (0x24a), region = 36 }
   0xc   : > { %v297_v0 = vld [vmem:[%s937_s0 + $0x78] sm:$0xff]  ;;  %v296_v2 = vld [vmem:[%s937_s0 + $0x70] sm:$0xff]  ;;  %v295_v4 = vld [vmem:[%s937_s0 + $0x68] sm:$0xff]  ;;  %s947_s15 = smov (!%p238_p4, %s741_s15), 1  ;;  %vm412_vm0 = vcmask 654336   ;;  %vm470_vm1 = vcmask 1043456  }
   0xd   : > { %v313_v1 = vld [vmem:[%s937_s0 + $0xf8] sm:$0xff]  ;;  %314 = vmatpush.msra.mxu0 %v297_v0  ;;  %652 = vmatpush.msra.mxu3 %v297_v0  ;;  %v312_v3 = vld [vmem:[%s937_s0 + $0xf0] sm:$0xff]  ;;  %v311_v5 = vld [vmem:[%s937_s0 + $0xe8] sm:$0xff]  ;;  %s650_s21 = sshll.u32 %s947_s15, 5  ;;  %vm458_vm2 = vcmask 1041408   ;;  %vm516_vm7 = vcmask 291840   ;;  %s261_s10 = scalar_lea.vmem %s941_s4, %s947_s15 }
   0xe   : > { %361 = vmatpush.msra.mxu1 %v313_v1  ;;  %668 = vmatpush.msra.mxu2 %v313_v1  ;;  %v294_v6 = vld [vmem:[%s937_s0 + $0x60] sm:$0xff]  ;;  %v293_v8 = vld [vmem:[%s937_s0 + $0x58] sm:$0xff]  ;;  %v292_v10 = vld [vmem:[%s937_s0 + $0x50] sm:$0xff]  ;;  %s883_s30 = scalar_lea.vmem %s940_s3, %s650_s21  ;;  %s246_s19 = scalar_lea.vmem %s939_s2, %s650_s21  ;;  %vm538_vm9 = vcmask 0  }
   0xf   : > { %315 = vmatpush.msra.mxu0 %v296_v2  ;;  %653 = vmatpush.msra.mxu3 %v296_v2  ;;  %v310_v7 = vld [vmem:[%s937_s0 + $0xe0] sm:$0xff]  ;;  %v309_v9 = vld [vmem:[%s937_s0 + $0xd8] sm:$0xff]  ;;  %v308_v11 = vld [vmem:[%s937_s0 + $0xd0] sm:$0xff] }
  0x10   : > { %362 = vmatpush.msra.mxu1 %v312_v3  ;;  %669 = vmatpush.msra.mxu2 %v312_v3  ;;  %v291_v12 = vld [vmem:[%s937_s0 + $0x48] sm:$0xff]  ;;  %v290_v14 = vld [vmem:[%s937_s0 + $0x40] sm:$0xff]  ;;  %v289_v16 = vld [vmem:[%s937_s0 + $0x38] sm:$0xff] }
  0x11   : > { %316 = vmatpush.msra.mxu0 %v295_v4  ;;  %654 = vmatpush.msra.mxu3 %v295_v4  ;;  %v307_v13 = vld [vmem:[%s937_s0 + $0xc8] sm:$0xff]  ;;  %v306_v15 = vld [vmem:[%s937_s0 + $0xc0] sm:$0xff]  ;;  %v305_v17 = vld [vmem:[%s937_s0 + $0xb8] sm:$0xff] }
  0x12   : > { %363 = vmatpush.msra.mxu1 %v311_v5  ;;  %670 = vmatpush.msra.mxu2 %v311_v5  ;;  %v288_v18 = vld [vmem:[%s937_s0 + $0x30] sm:$0xff]  ;;  %v287_v20 = vld [vmem:[%s937_s0 + $0x28] sm:$0xff]  ;;  %v286_v22 = vld [vmem:[%s937_s0 + $0x20] sm:$0xff] }
  0x13   : > { %317 = vmatpush.msra.mxu0 %v294_v6  ;;  %655 = vmatpush.msra.mxu3 %v294_v6  ;;  %v304_v19 = vld [vmem:[%s937_s0 + $0xb0] sm:$0xff]  ;;  %v303_v21 = vld [vmem:[%s937_s0 + $0xa8] sm:$0xff]  ;;  %v302_v23 = vld [vmem:[%s937_s0 + $0xa0] sm:$0xff] }
  0x14   : > { %364 = vmatpush.msra.mxu1 %v310_v7  ;;  %671 = vmatpush.msra.mxu2 %v310_v7  ;;  %v285_v24 = vld [vmem:[%s937_s0 + $0x18] sm:$0xff]  ;;  %v284_v26 = vld [vmem:[%s937_s0 + $0x10] sm:$0xff]  ;;  %v283_v28 = vld [vmem:[%s937_s0 + $0x8] sm:$0xff] }
  0x15   : > { %318 = vmatpush.msra.mxu0 %v293_v8  ;;  %656 = vmatpush.msra.mxu3 %v293_v8  ;;  %v301_v25 = vld [vmem:[%s937_s0 + $0x98] sm:$0xff]  ;;  %v300_v27 = vld [vmem:[%s937_s0 + $0x90] sm:$0xff]  ;;  %v266_v29 = vld [vmem:[%s883_s30] sm:$0xff] }
  0x16   : > { %365 = vmatpush.msra.mxu1 %v309_v9  ;;  %672 = vmatpush.msra.mxu2 %v309_v9  ;;  %v299_v30 = vld [vmem:[%s937_s0 + $0x88] sm:$0xff]  ;;  %v282_v32 = vld [vmem:[%s937_s0] sm:$0xff]  ;;  %v274_v34 = vmul.f32 %v266_v29, %v266_v29  ;;  %v268_v38 = vld [vmem:[%s883_s30 + $0x10] sm:$0xff] }
  0x17   : > { %319 = vmatpush.msra.mxu0 %v292_v10  ;;  %657 = vmatpush.msra.mxu3 %v292_v10  ;;  %v267_v31 = vld [vmem:[%s883_s30 + $0x8] sm:$0xff]  ;;  %v298_v33 = vld [vmem:[%s937_s0 + $0x80] sm:$0xff]  ;;  %v269_v39 = vld [vmem:[%s883_s30 + $0x18] sm:$0xff]  ;;  %v276_v40 = vmul.f32 %v268_v38, %v268_v38 }
  0x18   : > { %366 = vmatpush.msra.mxu1 %v308_v11  ;;  %673 = vmatpush.msra.mxu2 %v308_v11  ;;  %v262_v35 = vld [vmem:[%s246_s19] sm:$0xff]  ;;  %v275_v36 = vmul.f32 %v267_v31, %v267_v31  ;;  %v263_v37 = vld [vmem:[%s246_s19 + $0x8] sm:$0xff]  ;;  %v264_v41 = vld [vmem:[%s246_s19 + $0x10] sm:$0xff]  ;;  %v277_v42 = vmul.f32 %v269_v39, %v269_v39 }
  0x19   : > { %320 = vmatpush.msra.mxu0 %v291_v12  ;;  %658 = vmatpush.msra.mxu3 %v291_v12  ;;  %v265_v43 = vld [vmem:[%s246_s19 + $0x18] sm:$0xff]  ;;  %v278_v44 = vmul.f32 %v266_v29, %v262_v35  ;;  %v279_v45 = vmul.f32 %v267_v31, %v263_v37  ;;  %v280_v46 = vmul.f32 %v268_v38, %v264_v41 }
  0x1a   : > { %367 = vmatpush.msra.mxu1 %v307_v13  ;;  %674 = vmatpush.msra.mxu2 %v307_v13  ;;  %v281_v47 = vmul.f32 %v269_v39, %v265_v43  ;;  %v270_v48 = vmul.f32 %v262_v35, %v262_v35  ;;  %v271_v49 = vmul.f32 %v263_v37, %v263_v37 }
  0x1b   : > { %321 = vmatpush.msra.mxu0 %v290_v14  ;;  %659 = vmatpush.msra.mxu3 %v290_v14  ;;  %v272_v50 = vmul.f32 %v264_v41, %v264_v41  ;;  %v273_v51 = vmul.f32 %v265_v43, %v265_v43 }
  0x1c   : > { %368 = vmatpush.msra.mxu1 %v306_v15  ;;  %675 = vmatpush.msra.mxu2 %v306_v15 }
  0x1d   : > { %322 = vmatpush.msra.mxu0 %v289_v16  ;;  %660 = vmatpush.msra.mxu3 %v289_v16 }
  0x1e   : > { %369 = vmatpush.msra.mxu1 %v305_v17  ;;  %676 = vmatpush.msra.mxu2 %v305_v17 }
  0x1f   : > { %323 = vmatpush.msra.mxu0 %v288_v18  ;;  %661 = vmatpush.msra.mxu3 %v288_v18  ;;  %v408_v18 = vld [vmem:[%s938_s1] sm:$0xff] }
  0x20   : > { %370 = vmatpush.msra.mxu1 %v304_v19  ;;  %677 = vmatpush.msra.mxu2 %v304_v19  ;;  %v410_v19 = vld [vmem:[%s938_s1 + $0x10] sm:$0xff] }
  0x21   : > { %324 = vmatpush.msra.mxu0 %v287_v20  ;;  %662 = vmatpush.msra.mxu3 %v287_v20  ;;  %v409_v20 = vld [vmem:[%s938_s1 + $0x8] sm:$0xff] }
  0x22   : > { %371 = vmatpush.msra.mxu1 %v303_v21  ;;  %678 = vmatpush.msra.mxu2 %v303_v21  ;;  %v411_v21 = vld [vmem:[%s938_s1 + $0x18] sm:$0x3f] }
  0x23   : > { %325 = vmatpush.msra.mxu0 %v286_v22  ;;  %663 = vmatpush.msra.mxu3 %v286_v22 }
  0x24   : > { %372 = vmatpush.msra.mxu1 %v302_v23  ;;  %679 = vmatpush.msra.mxu2 %v302_v23 }
  0x25   : > { %326 = vmatpush.msra.mxu0 %v285_v24  ;;  %664 = vmatpush.msra.mxu3 %v285_v24 }
  0x26   : > { %373 = vmatpush.msra.mxu1 %v301_v25  ;;  %680 = vmatpush.msra.mxu2 %v301_v25 }
  0x27   : > { %327 = vmatpush.msra.mxu0 %v284_v26  ;;  %665 = vmatpush.msra.mxu3 %v284_v26 }
  0x28   : > { %374 = vmatpush.msra.mxu1 %v300_v27  ;;  %681 = vmatpush.msra.mxu2 %v300_v27 }
  0x29   : > { %328 = vmatpush.msra.mxu0 %v283_v28  ;;  %666 = vmatpush.msra.mxu3 %v283_v28 }
  0x2a   : > { %375 = vmatpush.msra.mxu1 %v299_v30  ;;  %682 = vmatpush.msra.mxu2 %v299_v30 }
  0x2b   : > { %329 = vmatpush.msra.mxu0 %v282_v32  ;;  %667 = vmatpush.msra.mxu3 %v282_v32 }
  0x2c   : > { %376 = vmatpush.msra.mxu1 %v298_v33  ;;  %683 = vmatpush.msra.mxu2 %v298_v33 }
  0x2d   : > { %330 = vmatmul.f32.vlgmr.msra.gmra.mxu0 %v262_v35  ;;  %348 = vmatmul.f32.vlgmr.msra.gmra.mxu3 %v274_v34 }
  0x2e   : > { %377 = vmatmul.f32.vlgmr.msra.gmra.mxu1 %v263_v37  ;;  %395 = vmatmul.f32.vlgmr.msra.gmra.mxu2 %v275_v36 }
  0x35   : > { %333 = vmatmul.f32.gmra.mxu0 %v264_v41  ;;  %351 = vmatmul.f32.gmra.mxu3 %v276_v40 }
  0x36   : > { %380 = vmatmul.f32.gmra.mxu1 %v265_v43  ;;  %398 = vmatmul.f32.gmra.mxu2 %v277_v42 }
  0x3d   : > { %336 = vmatmul.f32.gmra.mxu0 %v266_v29  ;;  %354 = vmatmul.f32.gmra.mxu3 %v278_v44 }
  0x3e   : > { %383 = vmatmul.f32.gmra.mxu1 %v267_v31  ;;  %401 = vmatmul.f32.gmra.mxu2 %v279_v45 }
  0x45   : > { %339 = vmatmul.f32.gmra.mxu0 %v268_v38  ;;  %357 = vmatmul.f32.gmra.mxu3 %v280_v46 }
  0x46   : > { %386 = vmatmul.f32.gmra.mxu1 %v269_v39  ;;  %404 = vmatmul.f32.gmra.mxu2 %v281_v47 }
  0x4d   : > { %342 = vmatmul.f32.gmra.mxu0 %v270_v48 }
  0x4e   : > { %389 = vmatmul.f32.gmra.mxu1 %v271_v49 }
  0x55   : > { %345 = vmatmul.f32.gmra.mxu0 %v272_v50 }
  0x56   : > { %392 = vmatmul.f32.gmra.mxu1 %v273_v51 }
  0xaa   : > { %v331_v52 = vpop.f32.mrf.mxu0 }
  0xab   : > { %v378_v53 = vpop.f32.mrf.mxu1 }
  0xac   : > { %v379_v17 = vadd.f32 %v378_v53, %v331_v52 }
  0xb0   : > { %v349_v54 = vpop.f32.mrf.mxu3 }
  0xb1   : > { %v396_v55 = vpop.f32.mrf.mxu2 }
  0xb2   : > { %v334_v56 = vpop.f32.mrf.mxu0  ;;  %v397_v9 = vadd.f32 %v396_v55, %v349_v54 }
  0xb3   : > { %v381_v57 = vpop.f32.mrf.mxu1 }
  0xb4   : > { %v382_v16 = vadd.f32 %v381_v57, %v334_v56 }
  0xb8   : > { %v352_v58 = vpop.f32.mrf.mxu3 }
  0xb9   : > { %v399_v59 = vpop.f32.mrf.mxu2 }
  0xba   : > { %v337_v60 = vpop.f32.mrf.mxu0  ;;  %v400_v8 = vadd.f32 %v399_v59, %v352_v58 }
  0xbb   : > { %v384_v61 = vpop.f32.mrf.mxu1 }
  0xbc   : > { %v385_v15 = vadd.f32 %v384_v61, %v337_v60 }
  0xc0   : > { %v355_v62 = vpop.f32.mrf.mxu3 }
  0xc1   : > { %v402_v63 = vpop.f32.mrf.mxu2 }
  0xc2   : > { %v340_v0 = vpop.f32.mrf.mxu0  ;;  %v403_v7 = vadd.f32 %v402_v63, %v355_v62 }
  0xc3   : > { %v387_v1 = vpop.f32.mrf.mxu1 }
  0xc4   : > { %v388_v14 = vadd.f32 %v387_v1, %v340_v0 }
  0xc8   : > { %v358_v2 = vpop.f32.mrf.mxu3 }
  0xc9   : > { %v405_v3 = vpop.f32.mrf.mxu2 }
  0xca   : > { %v406_v4 = vadd.f32 %v405_v3, %v358_v2  ;;  %v343_v5 = vpop.f32.mrf.mxu0 }
  0xcb   : > { %v390_v6 = vpop.f32.mrf.mxu1 }
  0xcc   : > { %431 = vmatpush.msrb.mxu2 %v406_v4  ;;  %684 = vmatpush.msrb.mxu3 %v406_v4  ;;  %v391_v13 = vadd.f32 %v390_v6, %v343_v5  ;;  %v751_v6 = vmov 216.0  }
  0xce   : > { %432 = vmatpush.msrb.mxu2 %v403_v7  ;;  %685 = vmatpush.msrb.mxu3 %v403_v7 }
  0xd0   : > { %433 = vmatpush.msrb.mxu2 %v400_v8  ;;  %686 = vmatpush.msrb.mxu3 %v400_v8 }
  0xd2   : > { %434 = vmatpush.msrb.mxu2 %v397_v9  ;;  %687 = vmatpush.msrb.mxu3 %v397_v9  ;;  %v346_v10 = vpop.f32.mrf.mxu0 }
  0xd3   : > { %v393_v11 = vpop.f32.mrf.mxu1 }
  0xd4   : > { %v394_v12 = vadd.f32 %v393_v11, %v346_v10 }
  0xd6   : > { %435 = vmatpush.msrb.mxu2 %v394_v12  ;;  %688 = vmatpush.msrb.mxu3 %v394_v12 }
  0xd8   : > { %436 = vmatpush.msrb.mxu2 %v391_v13  ;;  %689 = vmatpush.msrb.mxu3 %v391_v13 }
  0xda   : > { %437 = vmatpush.msrb.mxu2 %v388_v14  ;;  %690 = vmatpush.msrb.mxu3 %v388_v14 }
  0xdc   : > { %438 = vmatpush.msrb.mxu2 %v385_v15  ;;  %691 = vmatpush.msrb.mxu3 %v385_v15 }
  0xde   : > { %439 = vmatpush.msrb.mxu2 %v382_v16  ;;  %692 = vmatpush.msrb.mxu3 %v382_v16 }
  0xe0   : > { %440 = vmatpush.msrb.mxu2 %v379_v17  ;;  %693 = vmatpush.msrb.mxu3 %v379_v17 }
  0xe1   : > { %644 = vmatmul.msk.f32.vlgmr.msrb.gmra.mxu2 %vm412_vm0, %v408_v18  ;;  %646 = vmatmul.msk.f32.vlgmr.msrb.gmra.mxu3 %vm412_vm0, %v410_v19 }
  0xe9   : > { %645 = vmatmul.msk.f32.gmra.mxu2 %vm412_vm0, %v409_v20  ;;  %647 = vmatmul.msk.f32.gmra.mxu3 %vm412_vm0, %v411_v21 }
 0x164   : > { %v442_v22 = vpop.f32.mrf.mxu2  ;;  %v448_v29 = vpop.f32.mrf.mxu3 }
 0x165   : > { %v454_v23 = vmul.f32 %v442_v22, %v442_v22  ;;  %v459_v43 = vrot.slane %v442_v22, 6 }
 0x167   : > { %v465_v26 = vrot.slane %v454_v23, 4  ;;  %v481_v31 = vrot.slane %v454_v23, 6 }
 0x169   : > { %v468_v33 = vsub.f32 %v448_v29, %v465_v26 }
 0x16c   : > { %v445_v24 = vpop.f32.mrf.mxu2  ;;  %v451_v51 = vpop.f32.mrf.mxu3 }
 0x16d   : > { %v455_v25 = vmul.f32 %v445_v24, %v445_v24  ;;  %v467_v34 = vsub.f32 %v445_v24, %v465_v26  ;;  %v460_v39 = vrot.slane %v445_v24, 6 }
 0x16f   : > { %v471_v27 = vrot.slane %v455_v25, 4  ;;  %v482_v28 = vrot.slane %v455_v25, 6  ;;  %v461_v46 = vsel %vm458_vm2, %v459_v43, %v460_v39 }
 0x170   : > { %v463_v50 = vmul.f32 %v461_v46, %v442_v22 }
 0x171   : > { %v472_v30 = vsel %vm470_vm1, %v465_v26, %v471_v27  ;;  %v483_v36 = vsel %vm458_vm2, %v481_v31, %v482_v28 }
 0x172   : > { %v474_v32 = vsub.f32 %v448_v29, %v472_v30  ;;  %v485_v40 = vadd.f32 %v483_v36, %v454_v23  ;;  %v475_v52 = vsub.f32 %v451_v51, %v463_v50  ;;  %v476_v56 = vmul.f32 2.0, %v463_v50 }
 0x174   : > { %v488_v35 = vrot.slane %v474_v32, 6  ;;  %v486_v47 = vadd.f32 6.5025, %v485_v40  ;;  %v478_v54 = vmul.f32 2.0, %v475_v52  ;;  %v477_v62 = vadd.f32 6.5025, %v476_v56 }
 0x176   : > { %v490_v37 = vadd.f32 %v488_v35, %v467_v34  ;;  %v491_v38 = vadd.f32 %v488_v35, %v468_v33  ;;  %v479_v59 = vadd.f32 58.5225, %v478_v54 }
 0x178   : > { %v492_v41 = vadd.f32 58.5225, %v490_v37  ;;  %v493_v42 = vadd.f32 58.5225, %v491_v38  ;;  %v480_v1 = vmul.f32 %v479_v59, %v477_v62 }
 0x17a   : > { %v496_v44 = vrot.slane %v492_v41, 4  ;;  %v497_v45 = vrot.slane %v493_v42, 4 }
 0x17c   : > { %v498_v48 = vsel %vm470_vm1, %v496_v44, %v497_v45 }
 0x17d   : > { %v500_v49 = vmul.f32 %v498_v48, %v486_v47 }
 0x17f   : > { %723 = vrcp.f32 %v500_v49  ;;  %v512_v58 = vand.u32 2147483648, %v500_v49  ;;  %v510_v61 = vand.u32 2147483647, %v500_v49  ;;  %vm506_vm4 = vweird.f32 %v500_v49 }
 0x180   : > { %725 = vrcp.f32 %v751_v6 }
 0x181   : > { %v513_v0 = vor.u32 1.1754944e-38, %v512_v58  ;;  %vm511_vm6 = vcmp.eq.f32.partialorder %v510_v61, 8.507059e+37 }
 0x185   : > { %v724_v53 = vpop.eup %723 }
 0x186   : > { %v502_v55 = vmul.f32 %v724_v53, %v500_v49  ;;  %vm507_vm3 = vweird.f32 %v724_v53  ;;  %v726_v7 = vpop.eup %725 }
 0x187   : > { %vm508_vm5 = vmor %vm506_vm4, %vm507_vm3  ;;  %v528_v8 = vmul.f32 216.0, %v726_v7  ;;  %vm532_vm8 = vweird.f32 %v726_v7 }
 0x188   : > { %v503_v57 = vsub.f32 1.0, %v502_v55 }
 0x189   : > { %v529_v9 = vsub.f32 1.0, %v528_v8 }
 0x18a   : > { %v504_v60 = vmul.f32 %v724_v53, %v503_v57 }
 0x18b   : > { %v530_v13 = vmul.f32 %v726_v7, %v529_v9 }
 0x18c   : > { %v505_v63 = vadd.f32 %v724_v53, %v504_v60 }
 0x18d   : > { %v531_v16 = vadd.f32 %v726_v7, %v530_v13 }
 0x18e   : > { %v509_v2 = vsel %vm508_vm5, %v724_v53, %v505_v63 }
 0x18f   : > { %v514_v3 = vsel %vm511_vm6, %v513_v0, %v509_v2  ;;  %v533_v19 = vsel %vm532_vm8, %v726_v7, %v531_v16 }
 0x190   : > { %v515_v4 = vmul.f32 %v514_v3, %v480_v1 }
 0x192   : > { %v517_v5 = vsel %vm516_vm7, %v515_v4, 0.0 }
 0x193   : > { %518 = vadd.xlane.f32.xlu0 %v517_v5 }
 0x206   : > { %v519_v10 = vpop.xlane.xlu0 %518 }
 0x207   : > { %v520_v11 = vrot.slane %v519_v10, 4 }
 0x209   : > { %v521_v12 = vadd.f32 %v520_v11, %v519_v10 }
 0x20b   : > { %v522_v14 = vrot.slane %v521_v12, 2 }
 0x20d   : > { %v523_v15 = vadd.f32 %v522_v14, %v521_v12 }
 0x20f   : > { %v524_v17 = vrot.slane %v523_v15, 1 }
 0x211   : > { %v525_v18 = vadd.f32 %v524_v17, %v523_v15 }
 0x213   : > { %694 = vpush %v525_v18 }
 0x214   : > { %696 = vpush %v533_v19 }
 0x244   : > { %s695_s6 = spop %694 }
 0x245   : > { %s697_s7 = spop %696 }
 0x246   : > { %s535_s11 = smul.f32 %s697_s7, %s695_s6 }
 0x248   : > { %v536_v20 = vstv %s535_s11 }
 0x249   : > { %539 = vst.msk [vmem:[%s261_s10] sm:$0x1] %vm538_vm9, %v536_v20 }
 0x24a PF: > { %s14_s17 = sadd.s32 1, %s749_s17   ;;  %s942_s15 = smov %s745_s16 }
 0x24b   : > { %p11_p5 = scmp.ge.s32.totalorder %s14_s17, 4   ;;  %s943_s16 = smov %s945_s18 }
 0x24d   :  { %13 = sbr.rel (!%p11_p5) target bundleno = 2 (0x2), region = 69 }

</bundles_post_ra>
